<compile_context>
chip_gen: v6e
topology: v6e:2x2x1
jax: 0.10.0
libtpu: 0.0.40
codegen_flags: <defaults>
</compile_context>

<pallas_src>
import functools

import jax
import jax.numpy as jnp
from jax.experimental import pallas as pl
from jax.experimental.pallas import tpu as pltpu


# ----------------------------------------------------------------------------
# Pallas kernel: whole fused MLP forward for one batch tile (batch on lanes).
# ----------------------------------------------------------------------------
def _x_mlp_kernel(rt_ref, ft_ref, w1_ref, w2_ref, wc1r_ref, wc1h_ref, wc2_ref,
                  wc3_ref, bias_ref, o_ref, *, len_x, bounded):
    # packed biases / upper bound, one static column slice each (f32)
    b1 = bias_ref[:, 0:1]
    b2 = bias_ref[:, 1:2]
    bc1 = bias_ref[:, 2:3]
    bc2 = bias_ref[:, 3:4]
    bc3 = bias_ref[0:len_x, 4:5]
    ub = bias_ref[0:len_x, 5:6]

    # ---- net_feature: Linear -> ReLU -> Linear -> ReLU ----
    # W @ x^T == (x @ W^T)^T, i.e. identical math to torch Linear.
    h = jnp.dot(w1_ref[...], ft_ref[...],
                preferred_element_type=jnp.float32) + b1
    h = jnp.maximum(h, 0.0)
    h = jnp.dot(w2_ref[...], h, preferred_element_type=jnp.float32) + b2
    h = jnp.maximum(h, 0.0)                               # (hidden, TB), f32

    # ---- net_fc layer 1 on cat((r, h), dim=1) as a split matmul ----
    y = (jnp.dot(wc1r_ref[...], rt_ref[...],
                 preferred_element_type=jnp.float32)
         + jnp.dot(wc1h_ref[...], h, preferred_element_type=jnp.float32)
         + bc1)
    y = jnp.maximum(y, 0.0)

    # ---- net_fc layer 2 ----
    y = jnp.dot(wc2_ref[...], y, preferred_element_type=jnp.float32) + bc2
    y = jnp.maximum(y, 0.0)

    # ---- net_fc layer 3 (output) ----
    y = jnp.dot(wc3_ref[...], y, preferred_element_type=jnp.float32) + bc3

    if bounded:
        # out = (tanh(out) + 1) * (u_b - l_b) / 2 + l_b, with l_b = 0
        y = (jnp.tanh(y) + 1.0) * ub * 0.5

    o_ref[...] = y.astype(o_ref.dtype)                    # lane-dense store


# ----------------------------------------------------------------------------
# Pure-JAX reference (mirrors the PyTorch forward exactly; torch weight layout)
# ----------------------------------------------------------------------------
def x_mlp_reference(r, feature, params, *, len_lambda, len_feature, len_x,
                    bounded):
    (w1, w2, wc1r, wc1h, wc2, wc3, bias_pack) = params
    b1, b2 = bias_pack[:, 0], bias_pack[:, 1]
    bc1, bc2 = bias_pack[:, 2], bias_pack[:, 3]
    bc3, ub = bias_pack[:len_x, 4], bias_pack[:len_x, 5]

    r = r.reshape(-1, len_lambda)
    feature = feature.reshape(-1, len_feature)
    h = jnp.maximum(feature @ w1.T + b1, 0.0)
    h = jnp.maximum(h @ w2.T + b2, 0.0)
    rf = jnp.concatenate([r, h], axis=1)
    wc1 = jnp.concatenate([wc1r, wc1h], axis=1)           # (hidden, len_lambda+hidden)
    y = jnp.maximum(rf @ wc1.T + bc1, 0.0)
    y = jnp.maximum(y @ wc2.T + bc2, 0.0)
    y = y @ wc3.T + bc3
    if bounded:
        y = (jnp.tanh(y) + 1.0) * ub * 0.5
    return y


# ----------------------------------------------------------------------------
# Batch-tile selection: multiple of 128 lanes, large by default, and >= 2 grid
# steps whenever the padded batch spans more than one 128-lane group (so both
# v7x TensorCores get work through the "parallel" grid axis).
# ----------------------------------------------------------------------------
def _choose_batch_tile(batch, tile_b):
    b128 = ((batch + 127) // 128) * 128
    tile_b = max(128, (int(tile_b) // 128) * 128)
    if b128 <= 128:
        return 128, 1, 128
    tile = min(tile_b, b128)
    if tile >= b128:
        # would collapse to a single grid step -> split into (at least) two
        tile = max(128, (((b128 // 2) + 127) // 128) * 128)
    n_tiles = pl.cdiv(b128, tile)
    return tile, n_tiles, n_tiles * tile


# ----------------------------------------------------------------------------
# Wrapper
# ----------------------------------------------------------------------------
def x_mlp_forward(r, feature, params, *, len_lambda, len_feature, len_x,
                  bounded, tile_b=4096, compute_dtype=jnp.float32,
                  min_pallas_batch=1024):
    r = r.reshape(-1, len_lambda).astype(jnp.float32)
    feature = feature.reshape(-1, len_feature).astype(jnp.float32)
    B = r.shape[0]
    assert feature.shape[0] == B

    # Tiny batches are pure launch/fixed-overhead territory: use the XLA path.
    if B < min_pallas_batch:
        return x_mlp_reference(r, feature, params,
                               len_lambda=len_lambda, len_feature=len_feature,
                               len_x=len_x, bounded=bounded)

    (w1, w2, wc1r, wc1h, wc2, wc3, bias_pack) = params

    tile, n_tiles, b_pad = _choose_batch_tile(B, tile_b)
    pad = b_pad - B

    # One fused transpose+pad+cast per input; no concat ever materializes.
    r_t = jnp.pad(r.T, ((0, 0), (0, pad))).astype(compute_dtype)        # (len_lambda, b_pad)
    f_t = jnp.pad(feature.T, ((0, 0), (0, pad))).astype(compute_dtype)  # (len_feature, b_pad)

    # Only the first-layer weights (which multiply the streamed inputs) take
    # compute_dtype; everything downstream stays f32 (no intermediate casts).
    w1c = w1.astype(compute_dtype)
    wc1rc = wc1r.astype(compute_dtype)
    w2c = w2.astype(jnp.float32)
    wc1hc = wc1h.astype(jnp.float32)
    wc2c = wc2.astype(jnp.float32)
    wc3c = wc3.astype(jnp.float32)
    bias_f32 = bias_pack.astype(jnp.float32)

    def full_spec(a):
        nd = a.ndim
        return pl.BlockSpec(a.shape, lambda i, _nd=nd: (0,) * _nd)

    kernel = functools.partial(_x_mlp_kernel, len_x=len_x, bounded=bounded)

    out_t = pl.pallas_call(
        kernel,
        out_shape=jax.ShapeDtypeStruct((len_x, b_pad), jnp.float32),
        grid_spec=pltpu.PrefetchScalarGridSpec(
            num_scalar_prefetch=0,
            grid=(n_tiles,),
            in_specs=[
                pl.BlockSpec((len_lambda, tile), lambda i: (0, i)),   # r^T  (streamed)
                pl.BlockSpec((len_feature, tile), lambda i: (0, i)),  # f^T  (streamed)
                full_spec(w1c), full_spec(w2c),
                full_spec(wc1rc), full_spec(wc1hc),
                full_spec(wc2c), full_spec(wc3c),
                full_spec(bias_f32),
            ],
            out_specs=pl.BlockSpec((len_x, tile), lambda i: (0, i)),
        ),
        compiler_params=pltpu.CompilerParams(
            dimension_semantics=("parallel",)),
    )(r_t, f_t, w1c, w2c, wc1rc, wc1hc, wc2c, wc3c, bias_f32)

    # (len_x, B) -> (B, len_x); output bytes are tiny (16 B / row), cheap.
    return out_t[:, :B].T


# ----------------------------------------------------------------------------
# Deterministic parameter init (synthetic, PyTorch-Linear-like uniform).
# Weights kept in torch (out_features, in_features) layout; biases + u_b packed
# into one (hidden, 8) f32 slab (cols: b1, b2, bc1, bc2, bc3-pad, ub-pad, 0, 0).
# ----------------------------------------------------------------------------
def init_params(key, len_lambda, len_feature, len_x, hidden):
    # bias_pack stores bc3/u_b in its first len_x rows -> requires hidden >= len_x.
    assert hidden >= len_x, "bias packing requires hidden_size >= len_x"

    def linear(k, fan_in, fan_out):
        kw, kb = jax.random.split(k)
        bound = 1.0 / jnp.sqrt(fan_in)
        w = jax.random.uniform(kw, (fan_out, fan_in), jnp.float32, -bound, bound)
        b = jax.random.uniform(kb, (fan_out,), jnp.float32, -bound, bound)
        return w, b

    keys = jax.random.split(key, 6)
    w1, b1 = linear(keys[0], len_feature, hidden)
    w2, b2 = linear(keys[1], hidden, hidden)
    wc1, bc1 = linear(keys[2], hidden + len_lambda, hidden)
    wc1r, wc1h = wc1[:, :len_lambda], wc1[:, len_lambda:]  # split for cat-free matmul
    wc2, bc2 = linear(keys[3], hidden, hidden)
    wc3, bc3 = linear(keys[4], hidden, len_x)
    # arg_nn.u_b[:-1] -> length-len_x upper-bound vector (l_b = 0)
    ub = jax.random.uniform(keys[5], (len_x,), jnp.float32, 0.5, 2.0)

    bias_pack = jnp.zeros((hidden, 8), jnp.float32)
    bias_pack = bias_pack.at[:, 0].set(b1)
    bias_pack = bias_pack.at[:, 1].set(b2)
    bias_pack = bias_pack.at[:, 2].set(bc1)
    bias_pack = bias_pack.at[:, 3].set(bc2)
    bias_pack = bias_pack.at[:len_x, 4].set(bc3)
    bias_pack = bias_pack.at[:len_x, 5].set(ub)
    return (w1, w2, wc1r, wc1h, wc2, wc3, bias_pack)


if __name__ == "__main__":
    # Small shapes consistent with the module's forward.
    LEN_X, LEN_LAMBDA, LEN_FEATURE, HIDDEN = 4, 4, 16, 32
    BATCH = 300        # deliberately not a multiple of 128 / the batch tile
    BOUNDED = True

    key = jax.random.PRNGKey(0)
    kp, kr, kf = jax.random.split(key, 3)
    params = init_params(kp, LEN_LAMBDA, LEN_FEATURE, LEN_X, HIDDEN)

    r = jax.random.normal(kr, (BATCH, LEN_LAMBDA), jnp.float32)
    feature = jax.random.normal(kf, (BATCH, LEN_FEATURE), jnp.float32)

    ref = x_mlp_reference(r, feature, params,
                          len_lambda=LEN_LAMBDA, len_feature=LEN_FEATURE,
                          len_x=LEN_X, bounded=BOUNDED)

    # 1) f32 Pallas path, small explicit tile: exercises padding + 3-step grid.
    out = x_mlp_forward(r, feature, params,
                        len_lambda=LEN_LAMBDA, len_feature=LEN_FEATURE,
                        len_x=LEN_X, bounded=BOUNDED,
                        tile_b=128, min_pallas_batch=0)
    out = jax.block_until_ready(out)
    assert out.shape == (BATCH, LEN_X)
    assert jnp.allclose(out, ref, atol=1e-5, rtol=1e-5), "f32 (tile=128) mismatch"

    # 2) f32 Pallas path, default large tile: auto-split into >=2 grid steps.
    out2 = x_mlp_forward(r, feature, params,
                         len_lambda=LEN_LAMBDA, len_feature=LEN_FEATURE,
                         len_x=LEN_X, bounded=BOUNDED,
                         min_pallas_batch=0)
    out2 = jax.block_until_ready(out2)
    assert jnp.allclose(out2, ref, atol=1e-5, rtol=1e-5), "f32 (default tile) mismatch"

    # 3) bf16 streamed-operand path (f32 accumulation + f32 intermediates).
    out_bf16 = x_mlp_forward(r, feature, params,
                             len_lambda=LEN_LAMBDA, len_feature=LEN_FEATURE,
                             len_x=LEN_X, bounded=BOUNDED,
                             compute_dtype=jnp.bfloat16, min_pallas_batch=0)
    out_bf16 = jax.block_until_ready(out_bf16)
    assert out_bf16.shape == (BATCH, LEN_X)
    assert jnp.allclose(out_bf16, ref, atol=5e-2, rtol=5e-2), "bf16 mismatch"

    # 4) small-batch fallback path (default threshold routes B=300 to XLA).
    out_fb = x_mlp_forward(r, feature, params,
                           len_lambda=LEN_LAMBDA, len_feature=LEN_FEATURE,
                           len_x=LEN_X, bounded=BOUNDED)
    out_fb = jax.block_until_ready(out_fb)
    assert jnp.allclose(out_fb, ref, atol=1e-6, rtol=1e-6), "fallback mismatch"

    print("KERNEL_OK")
</pallas_src>

<mosaic_0001>
module attributes {stable_mosaic.version = 11 : i64} {
  func.func @_x_mlp_kernel(%arg0: i32, %arg1: memref<4x128xf32, #tpu.memory_space<vmem>>, %arg2: memref<16x128xf32, #tpu.memory_space<vmem>>, %arg3: memref<32x16xf32, #tpu.memory_space<vmem>>, %arg4: memref<32x32xf32, #tpu.memory_space<vmem>>, %arg5: memref<32x4xf32, #tpu.memory_space<vmem>>, %arg6: memref<32x32xf32, #tpu.memory_space<vmem>>, %arg7: memref<32x32xf32, #tpu.memory_space<vmem>>, %arg8: memref<4x32xf32, #tpu.memory_space<vmem>>, %arg9: memref<32x8xf32, #tpu.memory_space<vmem>>, %arg10: memref<4x128xf32, #tpu.memory_space<vmem>>) attributes {dimension_semantics = [#tpu.dimension_semantics<parallel>], iteration_bounds = array<i64: 3>, scalar_prefetch = 0 : i64, scratch_operands = 0 : i64, tpu.core_type = #tpu.core_type<tc>, window_params = [{transform_indices = @transform_0, window_bounds = array<i64: 4, 128>}, {transform_indices = @transform_1, window_bounds = array<i64: 16, 128>}, {pipeline_mode = #tpu.pipeline_mode<synchronous>, transform_indices = @transform_2, window_bounds = array<i64: 32, 16>}, {pipeline_mode = #tpu.pipeline_mode<synchronous>, transform_indices = @transform_3, window_bounds = array<i64: 32, 32>}, {pipeline_mode = #tpu.pipeline_mode<synchronous>, transform_indices = @transform_4, window_bounds = array<i64: 32, 4>}, {pipeline_mode = #tpu.pipeline_mode<synchronous>, transform_indices = @transform_5, window_bounds = array<i64: 32, 32>}, {pipeline_mode = #tpu.pipeline_mode<synchronous>, transform_indices = @transform_6, window_bounds = array<i64: 32, 32>}, {pipeline_mode = #tpu.pipeline_mode<synchronous>, transform_indices = @transform_7, window_bounds = array<i64: 4, 32>}, {pipeline_mode = #tpu.pipeline_mode<synchronous>, transform_indices = @transform_8, window_bounds = array<i64: 32, 8>}, {transform_indices = @transform_9, window_bounds = array<i64: 4, 128>}]} {
    %c0 = arith.constant 0 : index
    %c0_0 = arith.constant 0 : index
    %0 = vector.load %arg9[%c0, %c0_0] : memref<32x8xf32, #tpu.memory_space<vmem>>, vector<32x1xf32>
    %c0_1 = arith.constant 0 : index
    %c1 = arith.constant 1 : index
    %1 = vector.load %arg9[%c0_1, %c1] : memref<32x8xf32, #tpu.memory_space<vmem>>, vector<32x1xf32>
    %c0_2 = arith.constant 0 : index
    %c2 = arith.constant 2 : index
    %2 = vector.load %arg9[%c0_2, %c2] : memref<32x8xf32, #tpu.memory_space<vmem>>, vector<32x1xf32>
    %c0_3 = arith.constant 0 : index
    %c3 = arith.constant 3 : index
    %3 = vector.load %arg9[%c0_3, %c3] : memref<32x8xf32, #tpu.memory_space<vmem>>, vector<32x1xf32>
    %c0_4 = arith.constant 0 : index
    %c4 = arith.constant 4 : index
    %4 = vector.load %arg9[%c0_4, %c4] : memref<32x8xf32, #tpu.memory_space<vmem>>, vector<4x1xf32>
    %c0_5 = arith.constant 0 : index
    %c5 = arith.constant 5 : index
    %5 = vector.load %arg9[%c0_5, %c5] : memref<32x8xf32, #tpu.memory_space<vmem>>, vector<4x1xf32>
    %c0_6 = arith.constant 0 : index
    %c0_7 = arith.constant 0 : index
    %6 = vector.load %arg3[%c0_6, %c0_7] : memref<32x16xf32, #tpu.memory_space<vmem>>, vector<32x16xf32>
    %c0_8 = arith.constant 0 : index
    %c0_9 = arith.constant 0 : index
    %7 = vector.load %arg2[%c0_8, %c0_9] : memref<16x128xf32, #tpu.memory_space<vmem>>, vector<16x128xf32>
    %cst = arith.constant dense<0.000000e+00> : vector<32x128xf32>
    %8 = tpu.matmul %6, %7, %cst {dimension_numbers = #tpu.dot_dimension_numbers<[1], [0], [0], [1], [0, 0, 1, 1], [], []>} : vector<32x16xf32>, vector<16x128xf32>, vector<32x128xf32> -> vector<32x128xf32>
    %9 = vector.broadcast %0 : vector<32x1xf32> to vector<32x128xf32>
    %10 = arith.addf %8, %9 : vector<32x128xf32>
    %cst_10 = arith.constant 0.000000e+00 : f32
    %11 = vector.broadcast %cst_10 : f32 to vector<32x128xf32>
    %12 = arith.maximumf %10, %11 : vector<32x128xf32>
    %c0_11 = arith.constant 0 : index
    %c0_12 = arith.constant 0 : index
    %13 = vector.load %arg4[%c0_11, %c0_12] : memref<32x32xf32, #tpu.memory_space<vmem>>, vector<32x32xf32>
    %cst_13 = arith.constant dense<0.000000e+00> : vector<32x128xf32>
    %14 = tpu.matmul %13, %12, %cst_13 {dimension_numbers = #tpu.dot_dimension_numbers<[1], [0], [0], [1], [0, 0, 1, 1], [], []>} : vector<32x32xf32>, vector<32x128xf32>, vector<32x128xf32> -> vector<32x128xf32>
    %15 = vector.broadcast %1 : vector<32x1xf32> to vector<32x128xf32>
    %16 = arith.addf %14, %15 : vector<32x128xf32>
    %cst_14 = arith.constant 0.000000e+00 : f32
    %17 = vector.broadcast %cst_14 : f32 to vector<32x128xf32>
    %18 = arith.maximumf %16, %17 : vector<32x128xf32>
    %c0_15 = arith.constant 0 : index
    %c0_16 = arith.constant 0 : index
    %19 = vector.load %arg5[%c0_15, %c0_16] : memref<32x4xf32, #tpu.memory_space<vmem>>, vector<32x4xf32>
    %c0_17 = arith.constant 0 : index
    %c0_18 = arith.constant 0 : index
    %20 = vector.load %arg1[%c0_17, %c0_18] : memref<4x128xf32, #tpu.memory_space<vmem>>, vector<4x128xf32>
    %cst_19 = arith.constant dense<0.000000e+00> : vector<32x128xf32>
    %21 = tpu.matmul %19, %20, %cst_19 {dimension_numbers = #tpu.dot_dimension_numbers<[1], [0], [0], [1], [0, 0, 1, 1], [], []>} : vector<32x4xf32>, vector<4x128xf32>, vector<32x128xf32> -> vector<32x128xf32>
    %c0_20 = arith.constant 0 : index
    %c0_21 = arith.constant 0 : index
    %22 = vector.load %arg6[%c0_20, %c0_21] : memref<32x32xf32, #tpu.memory_space<vmem>>, vector<32x32xf32>
    %cst_22 = arith.constant dense<0.000000e+00> : vector<32x128xf32>
    %23 = tpu.matmul %22, %18, %cst_22 {dimension_numbers = #tpu.dot_dimension_numbers<[1], [0], [0], [1], [0, 0, 1, 1], [], []>} : vector<32x32xf32>, vector<32x128xf32>, vector<32x128xf32> -> vector<32x128xf32>
    %24 = arith.addf %21, %23 : vector<32x128xf32>
    %25 = vector.broadcast %2 : vector<32x1xf32> to vector<32x128xf32>
    %26 = arith.addf %24, %25 : vector<32x128xf32>
    %cst_23 = arith.constant 0.000000e+00 : f32
    %27 = vector.broadcast %cst_23 : f32 to vector<32x128xf32>
    %28 = arith.maximumf %26, %27 : vector<32x128xf32>
    %c0_24 = arith.constant 0 : index
    %c0_25 = arith.constant 0 : index
    %29 = vector.load %arg7[%c0_24, %c0_25] : memref<32x32xf32, #tpu.memory_space<vmem>>, vector<32x32xf32>
    %cst_26 = arith.constant dense<0.000000e+00> : vector<32x128xf32>
    %30 = tpu.matmul %29, %28, %cst_26 {dimension_numbers = #tpu.dot_dimension_numbers<[1], [0], [0], [1], [0, 0, 1, 1], [], []>} : vector<32x32xf32>, vector<32x128xf32>, vector<32x128xf32> -> vector<32x128xf32>
    %31 = vector.broadcast %3 : vector<32x1xf32> to vector<32x128xf32>
    %32 = arith.addf %30, %31 : vector<32x128xf32>
    %cst_27 = arith.constant 0.000000e+00 : f32
    %33 = vector.broadcast %cst_27 : f32 to vector<32x128xf32>
    %34 = arith.maximumf %32, %33 : vector<32x128xf32>
    %c0_28 = arith.constant 0 : index
    %c0_29 = arith.constant 0 : index
    %35 = vector.load %arg8[%c0_28, %c0_29] : memref<4x32xf32, #tpu.memory_space<vmem>>, vector<4x32xf32>
    %cst_30 = arith.constant dense<0.000000e+00> : vector<4x128xf32>
    %36 = tpu.matmul %35, %34, %cst_30 {dimension_numbers = #tpu.dot_dimension_numbers<[1], [0], [0], [1], [0, 0, 1, 1], [], []>} : vector<4x32xf32>, vector<32x128xf32>, vector<4x128xf32> -> vector<4x128xf32>
    %37 = vector.broadcast %4 : vector<4x1xf32> to vector<4x128xf32>
    %38 = arith.addf %36, %37 : vector<4x128xf32>
    %39 = math.tanh %38 : vector<4x128xf32>
    %cst_31 = arith.constant 1.000000e+00 : f32
    %40 = vector.broadcast %cst_31 : f32 to vector<4x128xf32>
    %41 = arith.addf %39, %40 : vector<4x128xf32>
    %42 = vector.broadcast %5 : vector<4x1xf32> to vector<4x128xf32>
    %43 = arith.mulf %41, %42 : vector<4x128xf32>
    %cst_32 = arith.constant 5.000000e-01 : f32
    %44 = vector.broadcast %cst_32 : f32 to vector<4x128xf32>
    %45 = arith.mulf %43, %44 : vector<4x128xf32>
    %c0_33 = arith.constant 0 : index
    %c0_34 = arith.constant 0 : index
    %46 = vector.load %arg10[%c0_33, %c0_34] : memref<4x128xf32, #tpu.memory_space<vmem>>, vector<4x128xf32>
    tpu.vector_store %arg10[%c0_33, %c0_34], %45 {strides = array<i32>} : memref<4x128xf32, #tpu.memory_space<vmem>>, vector<4x128xf32>,
    return
  }
  func.func @transform_0(%arg0: i32) -> (i32, i32) {
    %c0_i32 = arith.constant 0 : i32
    %c0_i32_0 = arith.constant 0 : i32
    return %c0_i32, %arg0 : i32, i32
  }
  func.func @transform_1(%arg0: i32) -> (i32, i32) {
    %c0_i32 = arith.constant 0 : i32
    %c0_i32_0 = arith.constant 0 : i32
    return %c0_i32, %arg0 : i32, i32
  }
  func.func @transform_2(%arg0: i32) -> (i32, i32) {
    %c0_i32 = arith.constant 0 : i32
    %c0_i32_0 = arith.constant 0 : i32
    %c0_i32_1 = arith.constant 0 : i32
    return %c0_i32, %c0_i32_0 : i32, i32
  }
  func.func @transform_3(%arg0: i32) -> (i32, i32) {
    %c0_i32 = arith.constant 0 : i32
    %c0_i32_0 = arith.constant 0 : i32
    %c0_i32_1 = arith.constant 0 : i32
    return %c0_i32, %c0_i32_0 : i32, i32
  }
  func.func @transform_4(%arg0: i32) -> (i32, i32) {
    %c0_i32 = arith.constant 0 : i32
    %c0_i32_0 = arith.constant 0 : i32
    %c0_i32_1 = arith.constant 0 : i32
    return %c0_i32, %c0_i32_0 : i32, i32
  }
  func.func @transform_5(%arg0: i32) -> (i32, i32) {
    %c0_i32 = arith.constant 0 : i32
    %c0_i32_0 = arith.constant 0 : i32
    %c0_i32_1 = arith.constant 0 : i32
    return %c0_i32, %c0_i32_0 : i32, i32
  }
  func.func @transform_6(%arg0: i32) -> (i32, i32) {
    %c0_i32 = arith.constant 0 : i32
    %c0_i32_0 = arith.constant 0 : i32
    %c0_i32_1 = arith.constant 0 : i32
    return %c0_i32, %c0_i32_0 : i32, i32
  }
  func.func @transform_7(%arg0: i32) -> (i32, i32) {
    %c0_i32 = arith.constant 0 : i32
    %c0_i32_0 = arith.constant 0 : i32
    %c0_i32_1 = arith.constant 0 : i32
    return %c0_i32, %c0_i32_0 : i32, i32
  }
  func.func @transform_8(%arg0: i32) -> (i32, i32) {
    %c0_i32 = arith.constant 0 : i32
    %c0_i32_0 = arith.constant 0 : i32
    %c0_i32_1 = arith.constant 0 : i32
    return %c0_i32, %c0_i32_0 : i32, i32
  }
  func.func @transform_9(%arg0: i32) -> (i32, i32) {
    %c0_i32 = arith.constant 0 : i32
    %c0_i32_0 = arith.constant 0 : i32
    return %c0_i32, %arg0 : i32, i32
  }
}

</mosaic_0001>

<bundles_post_ra>
// kernel: tpu_custom_call.1
= control target key start
LH: loop header
LB: loop body
LE: loop exit
PB: predicated region body
PF: predicated region fallthrough
CT: control target
= control target key end

     0   :  { %14 = vsyncpa [#allocation4], 0  ;;  %s1805_s0 = inlined_call_operand.vmem [shape: f32[4,384], index: 0, kind: input, shape index: {}]   ;;  %s1806_s1 = inlined_call_operand.vmem [shape: f32[16,384], index: 1, kind: input, shape index: {}]   ;;  %s1807_s2 = inlined_call_operand.vmem [shape: f32[32,16], index: 2, kind: input, shape index: {}]   ;;  %s1808_s3 = inlined_call_operand.vmem [shape: f32[32,32], index: 3, kind: input, shape index: {}]   ;;  %s1809_s4 = inlined_call_operand.vmem [shape: f32[32,4], index: 4, kind: input, shape index: {}]   ;;  %s1810_s5 = inlined_call_operand.vmem [shape: f32[32,32], index: 5, kind: input, shape index: {}]   ;;  %s1811_s6 = inlined_call_operand.hbm [shape: f32[32,32], index: 6, kind: input, shape index: {}]   ;;  %s1812_s7 = inlined_call_operand.vmem [shape: f32[4,32], index: 7, kind: input, shape index: {}]   ;;  %s1813_s8 = inlined_call_operand.vmem [shape: f32[32,8], index: 8, kind: input, shape index: {}]   ;;  %s1814_s9 = inlined_call_operand.hbm [shape: f32[4,384], index: 9, kind: output, shape index: {}]  }
   0x1   :  { %15 = vsyncpa [#allocation5], 0 }
   0x2   :  { %17 = vsyncpa [#allocation5 + $0x1], 0  ;;  %s1575_s30 = smov 0   ;;  %s1577_s10 = smov 0  }
   0x3   :  { %s1579_s11 = smov 0   ;;  %s1581_s12 = smov 0  }
   0x4 LB: > { %s1596_s13 = sadd.s32 4294967295, %s1511_s12   ;;  %s1201_s14 = sadd.s32 4294967294, %s1511_s12   ;;  %s1511_s12 = sphi %s1581_s12, %s1826_s12   ;;  %s1507_s11 = sphi %s1579_s11, %s1830_s11   ;;  %s1503_s10 = sphi %s1577_s10, %s1829_s10   ;;  %s1499_s30 = sphi %s1575_s30, %s1828_s30  }
   0x5   : > { %s1600_s15 = sadd.s32 1, %s1511_s12   ;;  %s56_s16 = sadd.s32 1, %s1507_s11 }
   0x6   : > { %1818 = sst [smem:[#allocation9_spill]] %s1600_s15  ;;  %s53_s17 = ssub.s32 %s1511_s12, %s1600_s15 }
   0x7   : > { %p63_p0 = scmp.ne.s32.totalorder %s1507_s11, %s1503_s10  ;;  %p54_p1 = scmp.eq.s32.totalorder %s53_s17, 0 }
   0x8   : > { %p64_p2 = scmp.eq.s32.totalorder %s1511_s12, 0  ;;  %p240_p3 = scmp.eq.s32.totalorder %s1596_s13, 2 }
   0x9   : > { %p245_p4 = scmp.ne.s32.totalorder %s1503_s10, %s1499_s30  ;;  %p246_p7 = scmp.eq.s32.totalorder %s1201_s14, 2 }
   0xa   : > { %s1612_s18 = scalar_select %p54_p1, %s1507_s11, %s56_s16  }
   0xb   : > { %p1614_p5 = por %p64_p2, %p63_p0  ;;  %p1618_p6 = por %p240_p3, %p63_p0 }
   0xc   : > { %1819 = sst [smem:[#allocation10_spill]] %s1612_s18  ;;  %p1202_p8 = scmp.ge.s32.totalorder %s1511_s12, 1 }
   0xd   : > { %s1821_s20 = scalar_select %p1618_p6, 1, 0 }
   0xe   : > { %p253_p9 = scmp.lt.s32.totalorder %s1511_s12, 4  ;;  %p1624_p10 = por %p246_p7, %p245_p4 }
   0xf   : > { %p1363_p11 = scmp.eq.s32.totalorder %s1596_s13, 0  ;;  %s1513_s23 = smov [#allocation3]  }
  0x10   : > { %s1822_s21 = scalar_select %p1624_p10, 1, 0 }
  0x11   : > { %p1629_p12 = pnand %p1202_p8, %p253_p9  ;;  %s277_s24 = sshll.u32 %s1513_s23, 4  ;;  %s278_s24 = int_to_ptr.vmem [resolvable:$true] %s277_s24 }
  0x12   : > { %s1432_s25 = scalar_lea.vmem %s278_s24, 512  ;;  %p1440_p7 = scmp.lt.s32.totalorder %s278_s24, %s278_s24 }
  0x13   : > { %p1355_p13 = pneg %p1629_p12  ;;  %p1433_p2 = scmp.ne.s32.totalorder %s278_s24, %s1432_s25 }
  0x14   : > { %p1441_p10 = scmp.lt.s32.totalorder %s1432_s25, %s1432_s25 }
  0x15   : > { %p1356_p0 = pnand %p1363_p11, %p1355_p13 }
  0x16   : > { %p1442_p6 = por %p1441_p10, %p1440_p7 }
  0x17   : > { %p1423_p1 = pneg %p1356_p0 }
  0x19   : > { %p1435_p3 = pnand %p1433_p2, %p1423_p1 }
  0x1b   : > { %p1436_p4 = pneg %p1435_p3 }
  0x1d   : > { %p1443_p8 = pnand %p1442_p6, %p1436_p4 }
  0x1f   : > { %1446 = shalt.err (!%p1443_p8)
}
  0x20   : > { %s1514_s26 = smov 128   ;;  %s1515_s27 = smov 8  }
  0x21   : > { %1358 = dma.hbm_to_vmem [thread:$0]  (!%p1356_p0), %s1811_s6, 512, %s278_s24, [#allocation4], %s1514_s26, %s1514_s26, %s1515_s27  }
  0x22   : > { %p1204_p9 = scmp.ge.s32.totalorder %s1511_s12, 3 }
  0x24   : > { %293 = sbr.rel (%p1204_p9) target bundleno = 46 (0x2e), region = 44 }
  0x29   : > { %303 = sbr.rel (!%p1614_p5) target bundleno = 46 (0x2e), region = 52  ;;  %s305_s14 = sand.u32 (%p1614_p5), 1, %s1507_s11  }
  0x2a   : > { %s1206_s16 = sshll.u32 (%p1614_p5), %s1511_s12, 3  ;;  %s1205_s17 = sshll.u32 (%p1614_p5), %s305_s14, 4 }
  0x2b   : > { %s309_s18 = scalar_lea.vmem (%p1614_p5), %s1806_s1, %s1206_s16  ;;  %s307_s15 = scalar_lea.vmem (%p1614_p5), [#allocation2], %s1205_s17 }
  0x2c   : > { %v340_v0 = vld [vmem:[%s309_s18] sm:$0xff] (%p1614_p5)  ;;  %v342_v1 = vld [vmem:[%s309_s18 + $0x18] sm:$0xff] (%p1614_p5) }
  0x2d   : > { %341 = vst [vmem:[%s307_s15] sm:$0xff] (%p1614_p5), %v340_v0  ;;  %343 = vst [vmem:[%s307_s15 + $0x8] sm:$0xff] (%p1614_p5), %v342_v1 }
  0x2e PF: > { %352 = sbr.rel (%p1629_p12) target bundleno = 1123 (0x463), region = 90  ;;  %s1651_s19 = sand.u32 (!%p1629_p12), 1, %s1503_s10  }
  0x2f   : > { %s1208_s24 = sshll.u32 (!%p1629_p12), %s1651_s19, 4 }
  0x30   : > { %s357_s26 = scalar_lea.vmem (!%p1629_p12), [#allocation2], %s1208_s24 }
  0x33   : > { %1490 = dma.done.wait (%p1363_p11), [#allocation4], 512  }
  0x34   : > { %1492 = vsyncadd (%p1363_p11), [#allocation4], 4294966784  ;;  %v1516_v2 = vmov 0   ;;  %vm433_vm0 = vcmask 130048   ;;  %v412_v3 = vld [vmem:[%s357_s26 + $0x8] sm:$0xff]  ;;  %v411_v4 = vld [vmem:[%s357_s26] sm:$0xff] }
  0x35   : > { %1410 = vset.pattern.permute.xlu1 %v1516_v2  ;;  %1409 = vset.pattern.permute.xlu0 %v1516_v2  ;;  %v407_v5 = vld [vmem:[%s1807_s2] sm:$0xff]  ;;  %v408_v6 = vld [vmem:[%s1807_s2 + $0x8] sm:$0xff]  ;;  %v1668_v7 = vld [vmem:[%s1813_s8 + $0x18] sm:$0xff]  ;;  %vm555_vm1 = vcmask 261120   ;;  %v1517_v14 = vmov 1   ;;  %p398_p5 = scmp.lt.s32.totalorder %s1596_s13, 2 }
  0x36   : > { %1278 = vmatprep.subr.mxu0 %v412_v3  ;;  %1282 = vmatprep.mubr.msk.f32.mxu0 %vm433_vm0, %v407_v5  ;;  %v1673_v8 = vld [vmem:[%s1813_s8 + $0x8] sm:$0xff]  ;;  %v409_v9 = vld [vmem:[%s1807_s2 + $0x10] sm:$0xff]  ;;  %v1689_v11 = vld [vmem:[%s1813_s8] sm:$0xff]  ;;  %vm776_vm2 = vcmask 1043456   ;;  %vm763_vm3 = vcmask 31744   ;;  %v1518_v40 = vmov 2  }
  0x37   : > { %1279 = vmatpush3.msra.mxu0 %v412_v3  ;;  %430 = vperm.xlu0 %1409, %v1668_v7   ;;  %v1683_v10 = vld [vmem:[%s1813_s8 + $0x10] sm:$0xff]  ;;  %v410_v12 = vld [vmem:[%s1807_s2 + $0x18] sm:$0xff]  ;;  %v535_v13 = vld [vmem:[%s1808_s3] sm:$0xff]  ;;  %s399_s24 = scalar_select %p398_p5, %s1596_s13, 2  ;;  %v1519_v61 = vmov 3   ;;  %vm1521_vm4 = vmmov 0  }
  0x38   : > { %1280 = vmatprep.subr.mxu0 %v411_v4  ;;  %420 = vperm.xlu1 %1410, %v1673_v8   ;;  %v536_v31 = vld [vmem:[%s1808_s3 + $0x8] sm:$0xff]  ;;  %v537_v32 = vld [vmem:[%s1808_s3 + $0x10] sm:$0xff]  ;;  %v538_v33 = vld [vmem:[%s1808_s3 + $0x18] sm:$0xff]  ;;  %s1210_s25 = sshll.u32 %s1651_s19, 2  ;;  %s1099_s28 = scalar_lea.sflag [#allocation5], %s1651_s19 }
  0x39   : > { %1281 = vmatpush3.msra.mxu0 %v411_v4  ;;  %1296 = vmatprep.mubr.msk.f32.mxu1 %vm555_vm1, %v535_v13  ;;  %s1211_s26 = sshll.u32 %s399_s24, 2  ;;  %v657_v35 = vld [vmem:[%s1809_s4] sm:$0xff]  ;;  %v658_v36 = vld [vmem:[%s1809_s4 + $0x8] sm:$0xff]  ;;  %v659_v38 = vld [vmem:[%s1809_s4 + $0x10] sm:$0xff]  ;;  %s1235_s24 = sshll.u32 %s1596_s13, 6 }
  0x3a   : > { %1283 = vmatmul.mubr.msk.f32.vlgmr.msra.gmra.mxu0 %vm433_vm0, %v408_v6  ;;  %s401_s22 = scalar_lea.vmem %s1805_s0, %s1211_s26  ;;  %v662_v37 = vld [vmem:[%s1810_s5] sm:$0xff]  ;;  %v660_v39 = vld [vmem:[%s1809_s4 + $0x18] sm:$0xff]  ;;  %v663_v57 = vld [vmem:[%s1810_s5 + $0x8] sm:$0xff]  ;;  %s397_s26 = scalar_lea.vmem [#allocation6], %s1210_s25 }
  0x3b   : > { %1285 = vmatprep.mubr.msk.f32.mxu0 %vm433_vm0, %v409_v9  ;;  %425 = vperm.xlu0 %1409, %v1683_v10   ;;  %v661_v34 = vld [vmem:[%s401_s22] sm:$0xf]  ;;  %v664_v58 = vld [vmem:[%s1810_s5 + $0x10] sm:$0xff]  ;;  %v665_v59 = vld [vmem:[%s1810_s5 + $0x18] sm:$0xff]  ;;  %s1112_s15 = sshll.u32 %s397_s26, 4  ;;  %s1110_s27 = scalar_lea.hbm %s1814_s9, %s1235_s24  ;;  %s1113_s15 = int_to_ptr.vmem [resolvable:$true] %s1112_s15 }
  0x3c   : > { %415 = vperm.xlu1 %1410, %v1689_v11   ;;  %v889_v60 = vld [vmem:[#allocation3] sm:$0xff]  ;;  %s1447_s29 = scalar_lea.vmem %s1113_s15, 64  ;;  %p1824_p10 = scmp.ne.s32.totalorder %s1821_s20, 0 }
  0x3d   : > { %p1448_p6 = scmp.ne.s32.totalorder %s1113_s15, %s1447_s29  ;;  %s1524_s14 = smov [#allocation6]  }
  0x3e   : > { %1286 = vmatmul.mubr.msk.f32.gmra.mxu0 %vm433_vm0, %v410_v12  ;;  %s1451_s16 = sshll.u32 %s1524_s14, 4  ;;  %s1452_s16 = int_to_ptr.vmem [resolvable:$false] %s1451_s16 }
  0x3f   : > { %1411 = vset.pattern.permute.xlu0 %v1517_v14  ;;  %1310 = vmatprep.mubr.msk.f32.mxu0 %vm555_vm1, %v662_v37  ;;  %p1449_p11 = pnand %p1448_p6, %p1824_p10  ;;  %s1453_s13 = scalar_lea.vmem %s1452_s16, 128 }
  0x40   : > { %1412 = vset.pattern.permute.xlu1 %v1517_v14  ;;  %552 = vperm.xlu0 %1411, %v1668_v7   ;;  %p1454_p13 = scmp.lt.s32.totalorder %s1113_s15, %s1452_s16  ;;  %p1455_p0 = scmp.lt.s32.totalorder %s1453_s13, %s1447_s29 }
  0x41   : > { %548 = vperm.xlu1 %1412, %v1683_v10   ;;  %p1450_p12 = pneg %p1449_p11 }
  0x42   : > { %p1456_p1 = por %p1455_p0, %p1454_p13 }
  0x44   : > { %540 = vperm.xlu0 %1411, %v1689_v11   ;;  %p1457_p2 = pnand %p1456_p1, %p1450_p12 }
  0x45   : > { %544 = vperm.xlu1 %1412, %v1673_v8  }
  0x48   : > { %1414 = vset.pattern.permute.xlu0 %v1518_v40 }
  0x49   : > { %1413 = vset.pattern.permute.xlu1 %v1518_v40  ;;  %874 = vperm.xlu0 %1414, %v1683_v10  }
  0x4a   : > { %878 = vperm.xlu1 %1413, %v1668_v7  }
  0x4d   : > { %1415 = vset.pattern.permute.xlu0 %v1519_v61 }
  0x4e   : > { %870 = vperm.xlu1 %1413, %v1673_v8   ;;  %906 = vperm.xlu0 %1415, %v1668_v7  }
  0x52   : > { %866 = vperm.xlu1 %1413, %v1689_v11   ;;  %894 = vperm.xlu0 %1415, %v1689_v11  }
  0x56   : > { %1416 = vset.pattern.permute.xlu1 %v1519_v61 }
  0x57   : > { %902 = vperm.xlu1 %1416, %v1683_v10  }
  0x5b   : > { %898 = vperm.xlu1 %1416, %v1673_v8  }
  0xb2   : > { %v431_v15 = vpop.permute.xlu0 %430 }
  0xb3   : > { %v421_v16 = vpop.permute.xlu1 %420 }
  0xb6   : > { %v426_v20 = vpop.permute.xlu0 %425 }
  0xb7   : > { %v416_v22 = vpop.permute.xlu1 %415 }
  0xbb   : > { %v553_v42 = vpop.permute.xlu0 %552 }
  0xbc   : > { %v549_v41 = vpop.permute.xlu1 %548 }
  0xbf   : > { %v541_v48 = vpop.permute.xlu0 %540 }
  0xc0   : > { %v545_v45 = vpop.permute.xlu1 %544 }
  0xc4   : > { %v875_v14 = vpop.permute.xlu0 %874 }
  0xc5   : > { %v879_v63 = vpop.permute.xlu1 %878 }
  0xc9   : > { %v871_v3 = vpop.permute.xlu1 %870 }
  0xfa   : > { %v1284_v17 = vpop.f32.mrf.mxu0 }
  0xfb   : > { %v518_v24 = vadd.f32 %v1284_v17, %v421_v16  ;;  %v867_v16 = vpop.permute.xlu1 %866 }
  0xfc   : > { %v512_v18 = vpop.f32.mrf.mxu0 }
  0xfd   : > { %v513_v27 = vadd.f32 %v512_v18, %v416_v22  ;;  %v532_v29 = vmax.f32 %v518_v24, 0.0  ;;  %v890_v22 = vld [vmem:[#allocation3 + $0x8] sm:$0xff]  ;;  %v892_v24 = vld [vmem:[#allocation3 + $0x18] sm:$0xff] }
  0xfe   : > { %v1287_v19 = vpop.f32.mrf.mxu0 }
  0xff   : > { %v528_v21 = vadd.f32 %v1287_v19, %v431_v15  ;;  %v531_v30 = vmax.f32 %v513_v27, 0.0  ;;  %v1522_v27 = vmov 4  }
 0x100   : > { %v522_v23 = vpop.f32.mrf.mxu0  ;;  %1417 = vset.pattern.permute.xlu1 %v1522_v27 }
 0x101   : > { %v534_v25 = vmax.f32 %v528_v21, 0.0  ;;  %v523_v26 = vadd.f32 %v522_v23, %v426_v20  ;;  %v891_v23 = vld [vmem:[#allocation3 + $0x10] sm:$0xff] }
 0x103   : > { %v533_v28 = vmax.f32 %v523_v26, 0.0  ;;  %1288 = vmatprep.subr.mxu1 %v534_v25  ;;  %v406_v26 = vld [vmem:[%s1813_s8] sm:$0xf] }
 0x104   : > { %1289 = vmatpush3.msra.mxu1 %v534_v25  ;;  %v1520_v25 = vmov 0.0   ;;  %1013 = vperm.xlu1 %1417, %v406_v26  }
 0x105   : > { %1290 = vmatprep.subr.mxu1 %v533_v28 }
 0x106   : > { %1291 = vmatpush3.msra.mxu1 %v533_v28  ;;  %v1523_v28 = vmov 5  }
 0x107   : > { %1292 = vmatprep.subr.mxu1 %v532_v29  ;;  %1418 = vset.pattern.permute.xlu0 %v1523_v28 }
 0x108   : > { %1293 = vmatpush3.msra.mxu1 %v532_v29  ;;  %1092 = vperm.xlu0 %1418, %v406_v26   ;;  %v903_v29 = vpop.permute.xlu1 %902 }
 0x109   : > { %1294 = vmatprep.subr.mxu1 %v531_v30 }
 0x10a   : > { %1295 = vmatpush3.msra.mxu1 %v531_v30  ;;  %v907_v30 = vpop.permute.xlu0 %906 }
 0x10b   : > { %1297 = vmatmul.mubr.msk.f32.vlgmr.msra.gmra.mxu1 %vm555_vm1, %v536_v31  ;;  %1316 = vmatprep.subr.msk.mxu1 %vm776_vm2, %v661_v34 }
 0x10c   : > { %1299 = vmatprep.mubr.msk.f32.mxu1 %vm555_vm1, %v537_v32  ;;  %1317 = vmatpush3.msk.msra.mxu1 %vm776_vm2, %v661_v34 }
 0x10d   : > { %1338 = vmatprep.subr.mxu1 %v1520_v25 }
 0x10f   : > { %1300 = vmatmul.mubr.msk.f32.gmra.mxu1 %vm555_vm1, %v538_v33  ;;  %v899_v33 = vpop.permute.xlu1 %898 }
 0x110   : > { %1318 = vmatprep.mubr.msk.f32.mxu1 %vm763_vm3, %v657_v35 }
 0x113   : > { %1319 = vmatmul.mubr.msk.f32.vlgmr.msra.gmra.mxu1 %vm763_vm3, %v658_v36  ;;  %v895_v36 = vpop.permute.xlu0 %894 }
 0x114   : > { %1321 = vmatprep.mubr.msk.f32.mxu1 %vm763_vm3, %v659_v38 }
 0x117   : > { %1322 = vmatmul.mubr.msk.f32.gmra.mxu1 %vm763_vm3, %v660_v39 }
 0x118   : > { %1346 = vmatprep.mubr.msk.f32.mxu1 %vm1521_vm4, %v1520_v25 }
 0x1cb   : > { %v1298_v43 = vpop.f32.mrf.mxu1 }
 0x1cc   : > { %v640_v50 = vadd.f32 %v1298_v43, %v545_v45  ;;  %v1010_v45 = vld [vmem:[%s1812_s7] sm:$0xf] }
 0x1cd   : > { %v634_v44 = vpop.f32.mrf.mxu1 }
 0x1ce   : > { %v635_v53 = vadd.f32 %v634_v44, %v541_v48  ;;  %v654_v55 = vmax.f32 %v640_v50, 0.0 }
 0x1cf   : > { %v1301_v46 = vpop.f32.mrf.mxu1 }
 0x1d0   : > { %v650_v47 = vadd.f32 %v1301_v46, %v553_v42  ;;  %v653_v56 = vmax.f32 %v635_v53, 0.0  ;;  %v1014_v46 = vpop.permute.xlu1 %1013 }
 0x1d1   : > { %v644_v49 = vpop.f32.mrf.mxu1 }
 0x1d2   : > { %v656_v51 = vmax.f32 %v650_v47, 0.0  ;;  %v645_v52 = vadd.f32 %v644_v49, %v549_v41 }
 0x1d3   : > { %v1320_v62 = vpop.f32.mrf.mxu1 }
 0x1d4   : > { %v655_v54 = vmax.f32 %v645_v52, 0.0  ;;  %1302 = vmatprep.subr.mxu0 %v656_v51 }
 0x1d5   : > { %1303 = vmatpush3.msra.mxu0 %v656_v51  ;;  %v846_v0 = vpop.f32.mrf.mxu1  ;;  %v1093_v51 = vpop.permute.xlu0 %1092 }
 0x1d6   : > { %1304 = vmatprep.subr.mxu0 %v655_v54 }
 0x1d7   : > { %1305 = vmatpush3.msra.mxu0 %v655_v54  ;;  %v1323_v2 = vpop.f32.mrf.mxu1 }
 0x1d8   : > { %1306 = vmatprep.subr.mxu0 %v654_v55 }
 0x1d9   : > { %1307 = vmatpush3.msra.mxu0 %v654_v55  ;;  %v856_v12 = vpop.f32.mrf.mxu1 }
 0x1da   : > { %1308 = vmatprep.subr.mxu0 %v653_v56 }
 0x1db   : > { %1309 = vmatpush3.msra.mxu0 %v653_v56 }
 0x1dc   : > { %1311 = vmatmul.mubr.msk.f32.vlgmr.msra.gmra.mxu0 %vm555_vm1, %v663_v57 }
 0x1dd   : > { %1313 = vmatprep.mubr.msk.f32.mxu0 %vm555_vm1, %v664_v58 }
 0x1e0   : > { %1314 = vmatmul.mubr.msk.f32.gmra.mxu0 %vm555_vm1, %v665_v59 }
 0x1e1   : > { %1332 = vmatprep.mubr.msk.f32.mxu0 %vm555_vm1, %v889_v60 }
 0x29c   : > { %v1312_v1 = vpop.f32.mrf.mxu0 }
 0x29d   : > { %v852_v6 = vadd.f32 %v1320_v62, %v1312_v1 }
 0x29e   : > { %v744_v4 = vpop.f32.mrf.mxu0 }
 0x29f   : > { %v847_v10 = vadd.f32 %v846_v0, %v744_v4  ;;  %v882_v8 = vadd.f32 %v871_v3, %v852_v6 }
 0x2a0   : > { %v1315_v5 = vpop.f32.mrf.mxu0 }
 0x2a1   : > { %v862_v9 = vadd.f32 %v1323_v2, %v1315_v5  ;;  %v881_v18 = vadd.f32 %v867_v16, %v847_v10  ;;  %v886_v20 = vmax.f32 %v882_v8, 0.0 }
 0x2a2   : > { %v754_v13 = vpop.f32.mrf.mxu0 }
 0x2a3   : > { %v884_v15 = vadd.f32 %v879_v63, %v862_v9  ;;  %v857_v7 = vadd.f32 %v856_v12, %v754_v13  ;;  %v885_v21 = vmax.f32 %v881_v18, 0.0 }
 0x2a5   : > { %v888_v17 = vmax.f32 %v884_v15, 0.0  ;;  %v883_v11 = vadd.f32 %v875_v14, %v857_v7 }
 0x2a7   : > { %v887_v19 = vmax.f32 %v883_v11, 0.0  ;;  %1324 = vmatprep.subr.mxu0 %v888_v17 }
 0x2a8   : > { %1325 = vmatpush3.msra.mxu0 %v888_v17 }
 0x2a9   : > { %1326 = vmatprep.subr.mxu0 %v887_v19 }
 0x2aa   : > { %1327 = vmatpush3.msra.mxu0 %v887_v19 }
 0x2ab   : > { %1328 = vmatprep.subr.mxu0 %v886_v20 }
 0x2ac   : > { %1329 = vmatpush3.msra.mxu0 %v886_v20 }
 0x2ad   : > { %1330 = vmatprep.subr.mxu0 %v885_v21 }
 0x2ae   : > { %1331 = vmatpush3.msra.mxu0 %v885_v21 }
 0x2af   : > { %1333 = vmatmul.mubr.msk.f32.vlgmr.msra.gmra.mxu0 %vm555_vm1, %v890_v22 }
 0x2b0   : > { %1335 = vmatprep.mubr.msk.f32.mxu0 %vm555_vm1, %v891_v23 }
 0x2b3   : > { %1336 = vmatmul.mubr.msk.f32.gmra.mxu0 %vm555_vm1, %v892_v24 }
 0x36f   : > { %v1334_v31 = vpop.f32.mrf.mxu0 }
 0x370   : > { %v993_v38 = vadd.f32 %v1334_v31, %v899_v33 }
 0x371   : > { %v987_v32 = vpop.f32.mrf.mxu0 }
 0x372   : > { %v988_v41 = vadd.f32 %v987_v32, %v895_v36  ;;  %v1007_v43 = vmax.f32 %v993_v38, 0.0 }
 0x373   : > { %v1337_v34 = vpop.f32.mrf.mxu0 }
 0x374   : > { %v1003_v35 = vadd.f32 %v1337_v34, %v907_v30  ;;  %v1006_v44 = vmax.f32 %v988_v41, 0.0 }
 0x375   : > { %v997_v37 = vpop.f32.mrf.mxu0 }
 0x376   : > { %v1009_v39 = vmax.f32 %v1003_v35, 0.0  ;;  %v998_v40 = vadd.f32 %v997_v37, %v903_v29 }
 0x378   : > { %v1008_v42 = vmax.f32 %v998_v40, 0.0  ;;  %1339 = vmatpush3.msra.mxu1 %v1009_v39 }
 0x379   : > { %1340 = vmatprep.subr.mxu1 %v1520_v25 }
 0x37a   : > { %1341 = vmatpush3.msra.mxu1 %v1008_v42 }
 0x37b   : > { %1342 = vmatprep.subr.mxu1 %v1520_v25 }
 0x37c   : > { %1343 = vmatpush3.msra.mxu1 %v1007_v43 }
 0x37d   : > { %1344 = vmatprep.subr.mxu1 %v1520_v25 }
 0x37e   : > { %1345 = vmatpush3.msra.mxu1 %v1006_v44 }
 0x37f   : > { %1347 = vmatmul.mubr.msk.f32.vlgmr.msra.gmra.mxu1 %vm555_vm1, %v1010_v45 }
 0x43f   : > { %v1085_v47 = vpop.f32.mrf.mxu1 }
 0x440   : > { %v1086_v48 = vadd.f32 %v1085_v47, %v1014_v46 }
 0x441   : > { %v1348_v49 = vpop.f32.mrf.mxu1 }
 0x442   : > { %1419 = vtanh.f32 %v1086_v48 }
 0x44f   : > { %v1420_v50 = vpop.eup %1419 }
 0x450   : > { %v1090_v52 = vadd.f32 1.0, %v1420_v50 }
 0x452   : > { %v1095_v53 = vmul.f32 %v1093_v51, %v1090_v52 }
 0x454   : > { %v1096_v54 = vmul.f32 0.5, %v1095_v53 }
 0x456   : > { %1097 = vst [vmem:[%s397_s26] sm:$0xf] %v1096_v54 }
 0x457   : > { %1460 = shalt.err (!%p1457_p2)
}
 0x458   : > { %s1461_s17 = scalar_lea.hbm %s1110_s27, 64  ;;  %s1465_s25 = scalar_lea.hbm %s1814_s9, 192 }
 0x459   : > { %p1462_p3 = scmp.ne.s32.totalorder %s1110_s27, %s1461_s17  ;;  %p1466_p8 = scmp.lt.s32.totalorder %s1110_s27, %s1814_s9 }
 0x45a   : > { %p1467_p9 = scmp.lt.s32.totalorder %s1465_s25, %s1461_s17 }
 0x45b   : > { %p1463_p4 = pnand %p1462_p3, %p1824_p10 }
 0x45c   : > { %p1468_p5 = por %p1467_p9, %p1466_p8 }
 0x45d   : > { %p1464_p7 = pneg %p1463_p4 }
 0x45f   : > { %p1469_p6 = pnand %p1468_p5, %p1464_p7 }
 0x461   : > { %1472 = shalt.err (!%p1469_p6)
}
 0x462   : > { %1353 = dma.vmem_to_hbm [thread:$0]  (%p1824_p10), %s1113_s15, 64, %s1110_s27, %s1099_s28  }
 0x463 PF: > { %p1365_p11 = scmp.ge.s32.totalorder %s1511_s12, 2  ;;  %s1124_s18 = sand.u32 1, %s1499_s30  }
 0x464   : > { %p1825_p12 = scmp.ne.s32.totalorder %s1822_s21, 0  ;;  %s1125_s22 = scalar_lea.sflag [#allocation5], %s1124_s18 }
 0x466   : > { %p1360_p13 = pnand %p1365_p11, %p1825_p12 }
 0x468   : > { %p1361_p0 = pneg %p1360_p13 }
 0x46a   : > { %1494 = dma.done.wait (%p1361_p0), %s1125_s22, 64  }
 0x46b   : > { %1496 = vsyncadd (%p1361_p0), %s1125_s22, 4294967232  ;;  %s1826_s12 = sld [smem:[#allocation9_spill]]  ;;  %s1828_s30 = smov %s1503_s10 }
 0x46c   : > { %s1827_s29 = sld [smem:[#allocation10_spill]]  ;;  %s1829_s10 = smov %s1507_s11 }
 0x471   : > { %p20_p1 = scmp.ge.s32.totalorder %s1826_s12, 5  }
 0x472   : > { %s1830_s11 = smov %s1827_s29 }
 0x473   :  { %22 = sbr.rel (!%p20_p1) target bundleno = 4 (0x4), region = 142 }
 0x478   :  { %1130 = vsyncpa [#allocation4], 1 }
 0x479   :  { %1132 = vsyncpa [#allocation4 + $0x1], 1 }
 0x47a   :  { %1133 = vsyncpa [#allocation5], 1 }
 0x47b   :  { %1135 = vsyncpa [#allocation5 + $0x1], 1 }

</bundles_post_ra>
